<compile_context>
chip_gen: v5e
topology: v5e:2x2
jax: 0.10.0
libtpu: 0.0.40
codegen_flags: <defaults>
</compile_context>

<pallas_src>
import jax
import jax.numpy as jnp
from jax.experimental import pallas as pl
from jax.experimental.pallas import tpu as pltpu


def _autoencoder_kernel(x_ref,
                        w1_ref, b1_ref,
                        w2_ref, b2_ref,
                        w3_ref, b3_ref,
                        w4_ref, b4_ref,
                        enc_ref, dec_ref):
    cdt = w1_ref.dtype                       # compute (MXU) dtype, e.g. bf16
    x = x_ref[...].astype(cdt)

    # ---- encoder ----
    h1 = jnp.dot(x, w1_ref[...], preferred_element_type=jnp.float32) + b1_ref[...]
    h1 = jnp.maximum(h1, 0.0)                                    # ReLU (f32)

    enc = jnp.dot(h1.astype(cdt), w2_ref[...],
                  preferred_element_type=jnp.float32) + b2_ref[...]
    enc = jnp.maximum(enc, 0.0)                                  # ReLU (f32)
    enc_ref[...] = enc.astype(enc_ref.dtype)

    # ---- decoder ----
    h3 = jnp.dot(enc.astype(cdt), w3_ref[...],
                 preferred_element_type=jnp.float32) + b3_ref[...]
    h3 = jnp.maximum(h3, 0.0)                                    # ReLU (f32)

    logits = jnp.dot(h3.astype(cdt), w4_ref[...],
                     preferred_element_type=jnp.float32) + b4_ref[...]
    # Sigmoid: exp on EUP + approx reciprocal on EUP (frees VALU slots).
    dec = pl.reciprocal(1.0 + jnp.exp(-logits), approx=True)
    dec_ref[...] = dec.astype(dec_ref.dtype)


def _pick_block_b(B, D, x_itemsize, budget_bytes=12 << 20, cap=512):
    """Batch-tile rows: double-buffered x/dec/enc tiles stay under `budget_bytes`."""
    per_row = 2 * (D * x_itemsize + D * 4 + 32 * 4)   # 2x buffers: x, dec, enc
    bb = max(8, min(cap, budget_bytes // per_row))
    bb = (bb // 8) * 8                                 # sublane multiple
    b_ceil = pl.cdiv(B, 8) * 8
    return int(min(bb, b_ceil))


def autoencoder_forward(x, params, *, block_b=None, compute_dtype=jnp.bfloat16):
    """x: [B, D] float. params: dict of f32 weights/biases. Returns (encoded, decoded)."""
    B, D = x.shape
    cdt = compute_dtype

    # Weights feed the MXU in bf16; biases stay f32 (added post-accumulation).
    w1 = params["w1"].astype(cdt); b1 = params["b1"].astype(jnp.float32)
    w2 = params["w2"].astype(cdt); b2 = params["b2"].astype(jnp.float32)
    w3 = params["w3"].astype(cdt); b3 = params["b3"].astype(jnp.float32)
    w4 = params["w4"].astype(cdt); b4 = params["b4"].astype(jnp.float32)

    x_itemsize = jnp.dtype(x.dtype).itemsize
    if block_b is None:
        block_b = _pick_block_b(B, D, x_itemsize)
    block_b = max(8, (int(block_b) // 8) * 8)

    # Pad batch so the grid tiles it exactly; slice the pad off afterwards.
    b_pad = pl.cdiv(B, block_b) * block_b
    x_in = jnp.pad(x, ((0, b_pad - B), (0, 0))) if b_pad != B else x
    grid = (b_pad // block_b,)

    # Explicit scoped-VMEM request: double-buffered batch tiles + resident weights.
    # Capped at 48 MiB so it fits every generation (v7x has 64 MiB physical / TC).
    w_itemsize = jnp.dtype(cdt).itemsize
    stream_bytes = 2 * block_b * (D * x_itemsize + D * 4 + 32 * 4)
    weight_bytes = 2 * (D * 64 + 64 * 32 + 32 * 64 + 64 * D) * w_itemsize
    bias_bytes = 2 * (64 + 32 + 64 + D) * 4
    vmem_bytes = int(min(max(2 * (stream_bytes + weight_bytes + bias_bytes) + (4 << 20),
                             16 << 20),
                         48 << 20))

    resident = lambda shape: pl.BlockSpec(shape, lambda i: (0, 0))

    enc, dec = pl.pallas_call(
        _autoencoder_kernel,
        out_shape=(
            jax.ShapeDtypeStruct((b_pad, 32), jnp.float32),   # encoded
            jax.ShapeDtypeStruct((b_pad, D), jnp.float32),    # decoded
        ),
        grid=grid,
        in_specs=[
            pl.BlockSpec((block_b, D), lambda i: (i, 0)),     # x, tiled on batch
            resident(w1.shape), resident(b1.shape),
            resident(w2.shape), resident(b2.shape),
            resident(w3.shape), resident(b3.shape),
            resident(w4.shape), resident(b4.shape),
        ],
        out_specs=(
            pl.BlockSpec((block_b, 32), lambda i: (i, 0)),    # encoded, tiled
            pl.BlockSpec((block_b, D), lambda i: (i, 0)),     # decoded, tiled
        ),
        compiler_params=pltpu.CompilerParams(
            dimension_semantics=("parallel",),                # v7x: 2 TCs share the grid
            vmem_limit_bytes=vmem_bytes,
        ),
    )(x_in, w1, b1, w2, b2, w3, b3, w4, b4)

    if b_pad != B:
        enc = enc[:B]
        dec = dec[:B]
    return enc, dec


def init_params(key, input_dim):
    """Deterministic PyTorch-style (uniform +/- 1/sqrt(fan_in)) init, [in,out] layout."""
    def linear(key, fan_in, fan_out):
        kw, kb = jax.random.split(key)
        bound = 1.0 / jnp.sqrt(fan_in)
        w = jax.random.uniform(kw, (fan_in, fan_out), jnp.float32, -bound, bound)
        b = jax.random.uniform(kb, (1, fan_out), jnp.float32, -bound, bound)
        return w, b

    k1, k2, k3, k4 = jax.random.split(key, 4)
    w1, b1 = linear(k1, input_dim, 64)
    w2, b2 = linear(k2, 64, 32)
    w3, b3 = linear(k3, 32, 64)
    w4, b4 = linear(k4, 64, input_dim)
    return dict(w1=w1, b1=b1, w2=w2, b2=b2, w3=w3, b3=b3, w4=w4, b4=b4)


def _reference_forward(x, p, compute_dtype=jnp.bfloat16):
    """Pure-JAX reference mirroring the kernel's bf16-operand / f32-accumulate math."""
    cdt = compute_dtype
    w1 = p["w1"].astype(cdt); w2 = p["w2"].astype(cdt)
    w3 = p["w3"].astype(cdt); w4 = p["w4"].astype(cdt)
    h1 = jnp.maximum(jnp.dot(x.astype(cdt), w1,
                             preferred_element_type=jnp.float32) + p["b1"], 0.0)
    enc = jnp.maximum(jnp.dot(h1.astype(cdt), w2,
                              preferred_element_type=jnp.float32) + p["b2"], 0.0)
    h3 = jnp.maximum(jnp.dot(enc.astype(cdt), w3,
                             preferred_element_type=jnp.float32) + p["b3"], 0.0)
    dec = jax.nn.sigmoid(jnp.dot(h3.astype(cdt), w4,
                                 preferred_element_type=jnp.float32) + p["b4"])
    return enc, dec


if __name__ == "__main__":
    key = jax.random.PRNGKey(0)
    kx, kp = jax.random.split(key)

    # Small deterministic example: batch=64, input_dim=32.
    # block_b=16 forces a 4-step batch grid so the pipelined path is exercised.
    B, INPUT_DIM = 64, 32
    x = jax.random.uniform(kx, (B, INPUT_DIM), jnp.float32)   # sigmoid range ~ input range
    params = init_params(kp, INPUT_DIM)

    enc, dec = autoencoder_forward(x, params, block_b=16)
    jax.block_until_ready((enc, dec))

    enc_ref, dec_ref = _reference_forward(x, params)
    assert enc.shape == (B, 32) and dec.shape == (B, INPUT_DIM)
    # enc: same bf16-operand/f32-accumulate math as reference -> only accumulation-order noise.
    assert jnp.allclose(enc, enc_ref, atol=1e-4, rtol=1e-4)
    # dec: additionally uses the EUP approximate reciprocal for the sigmoid denominator.
    assert jnp.allclose(dec, dec_ref, atol=1e-2, rtol=1e-2)

    print("KERNEL_OK")
</pallas_src>

<mosaic_0001>
module attributes {stable_mosaic.version = 11 : i64} {
  func.func @_autoencoder_kernel(%arg0: i32, %arg1: memref<16x32xf32, #tpu.memory_space<vmem>>, %arg2: memref<32x64xbf16, #tpu.memory_space<vmem>>, %arg3: memref<1x64xf32, #tpu.memory_space<vmem>>, %arg4: memref<64x32xbf16, #tpu.memory_space<vmem>>, %arg5: memref<1x32xf32, #tpu.memory_space<vmem>>, %arg6: memref<32x64xbf16, #tpu.memory_space<vmem>>, %arg7: memref<1x64xf32, #tpu.memory_space<vmem>>, %arg8: memref<64x32xbf16, #tpu.memory_space<vmem>>, %arg9: memref<1x32xf32, #tpu.memory_space<vmem>>, %arg10: memref<16x32xf32, #tpu.memory_space<vmem>>, %arg11: memref<16x32xf32, #tpu.memory_space<vmem>>) attributes {dimension_semantics = [#tpu.dimension_semantics<parallel>], iteration_bounds = array<i64: 4>, scalar_prefetch = 0 : i64, scratch_operands = 0 : i64, tpu.core_type = #tpu.core_type<tc>, window_params = [{transform_indices = @transform_0, window_bounds = array<i64: 16, 32>}, {pipeline_mode = #tpu.pipeline_mode<synchronous>, transform_indices = @transform_1, window_bounds = array<i64: 32, 64>}, {pipeline_mode = #tpu.pipeline_mode<synchronous>, transform_indices = @transform_2, window_bounds = array<i64: 1, 64>}, {pipeline_mode = #tpu.pipeline_mode<synchronous>, transform_indices = @transform_3, window_bounds = array<i64: 64, 32>}, {pipeline_mode = #tpu.pipeline_mode<synchronous>, transform_indices = @transform_4, window_bounds = array<i64: 1, 32>}, {pipeline_mode = #tpu.pipeline_mode<synchronous>, transform_indices = @transform_5, window_bounds = array<i64: 32, 64>}, {pipeline_mode = #tpu.pipeline_mode<synchronous>, transform_indices = @transform_6, window_bounds = array<i64: 1, 64>}, {pipeline_mode = #tpu.pipeline_mode<synchronous>, transform_indices = @transform_7, window_bounds = array<i64: 64, 32>}, {pipeline_mode = #tpu.pipeline_mode<synchronous>, transform_indices = @transform_8, window_bounds = array<i64: 1, 32>}, {transform_indices = @transform_9, window_bounds = array<i64: 16, 32>}, {transform_indices = @transform_10, window_bounds = array<i64: 16, 32>}]} {
    %c0 = arith.constant 0 : index
    %c0_0 = arith.constant 0 : index
    %0 = vector.load %arg1[%c0, %c0_0] : memref<16x32xf32, #tpu.memory_space<vmem>>, vector<16x32xf32>
    %1 = arith.truncf %0 : vector<16x32xf32> to vector<16x32xbf16>
    %c0_1 = arith.constant 0 : index
    %c0_2 = arith.constant 0 : index
    %2 = vector.load %arg2[%c0_1, %c0_2] : memref<32x64xbf16, #tpu.memory_space<vmem>>, vector<32x64xbf16>
    %cst = arith.constant dense<0.000000e+00> : vector<16x64xf32>
    %3 = tpu.matmul %1, %2, %cst {dimension_numbers = #tpu.dot_dimension_numbers<[1], [0], [0], [1], [0, 0, 1, 1], [], []>} : vector<16x32xbf16>, vector<32x64xbf16>, vector<16x64xf32> -> vector<16x64xf32>
    %c0_3 = arith.constant 0 : index
    %c0_4 = arith.constant 0 : index
    %4 = vector.load %arg3[%c0_3, %c0_4] : memref<1x64xf32, #tpu.memory_space<vmem>>, vector<1x64xf32>
    %5 = vector.broadcast %4 : vector<1x64xf32> to vector<16x64xf32>
    %6 = arith.addf %3, %5 : vector<16x64xf32>
    %cst_5 = arith.constant 0.000000e+00 : f32
    %7 = vector.broadcast %cst_5 : f32 to vector<16x64xf32>
    %8 = arith.maximumf %6, %7 : vector<16x64xf32>
    %9 = arith.truncf %8 : vector<16x64xf32> to vector<16x64xbf16>
    %c0_6 = arith.constant 0 : index
    %c0_7 = arith.constant 0 : index
    %10 = vector.load %arg4[%c0_6, %c0_7] : memref<64x32xbf16, #tpu.memory_space<vmem>>, vector<64x32xbf16>
    %cst_8 = arith.constant dense<0.000000e+00> : vector<16x32xf32>
    %11 = tpu.matmul %9, %10, %cst_8 {dimension_numbers = #tpu.dot_dimension_numbers<[1], [0], [0], [1], [0, 0, 1, 1], [], []>} : vector<16x64xbf16>, vector<64x32xbf16>, vector<16x32xf32> -> vector<16x32xf32>
    %c0_9 = arith.constant 0 : index
    %c0_10 = arith.constant 0 : index
    %12 = vector.load %arg5[%c0_9, %c0_10] : memref<1x32xf32, #tpu.memory_space<vmem>>, vector<1x32xf32>
    %13 = vector.broadcast %12 : vector<1x32xf32> to vector<16x32xf32>
    %14 = arith.addf %11, %13 : vector<16x32xf32>
    %cst_11 = arith.constant 0.000000e+00 : f32
    %15 = vector.broadcast %cst_11 : f32 to vector<16x32xf32>
    %16 = arith.maximumf %14, %15 : vector<16x32xf32>
    %c0_12 = arith.constant 0 : index
    %c0_13 = arith.constant 0 : index
    %17 = vector.load %arg10[%c0_12, %c0_13] : memref<16x32xf32, #tpu.memory_space<vmem>>, vector<16x32xf32>
    tpu.vector_store %arg10[%c0_12, %c0_13], %16 {strides = array<i32>} : memref<16x32xf32, #tpu.memory_space<vmem>>, vector<16x32xf32>,
    %18 = arith.truncf %16 : vector<16x32xf32> to vector<16x32xbf16>
    %c0_14 = arith.constant 0 : index
    %c0_15 = arith.constant 0 : index
    %19 = vector.load %arg6[%c0_14, %c0_15] : memref<32x64xbf16, #tpu.memory_space<vmem>>, vector<32x64xbf16>
    %cst_16 = arith.constant dense<0.000000e+00> : vector<16x64xf32>
    %20 = tpu.matmul %18, %19, %cst_16 {dimension_numbers = #tpu.dot_dimension_numbers<[1], [0], [0], [1], [0, 0, 1, 1], [], []>} : vector<16x32xbf16>, vector<32x64xbf16>, vector<16x64xf32> -> vector<16x64xf32>
    %c0_17 = arith.constant 0 : index
    %c0_18 = arith.constant 0 : index
    %21 = vector.load %arg7[%c0_17, %c0_18] : memref<1x64xf32, #tpu.memory_space<vmem>>, vector<1x64xf32>
    %22 = vector.broadcast %21 : vector<1x64xf32> to vector<16x64xf32>
    %23 = arith.addf %20, %22 : vector<16x64xf32>
    %cst_19 = arith.constant 0.000000e+00 : f32
    %24 = vector.broadcast %cst_19 : f32 to vector<16x64xf32>
    %25 = arith.maximumf %23, %24 : vector<16x64xf32>
    %26 = arith.truncf %25 : vector<16x64xf32> to vector<16x64xbf16>
    %c0_20 = arith.constant 0 : index
    %c0_21 = arith.constant 0 : index
    %27 = vector.load %arg8[%c0_20, %c0_21] : memref<64x32xbf16, #tpu.memory_space<vmem>>, vector<64x32xbf16>
    %cst_22 = arith.constant dense<0.000000e+00> : vector<16x32xf32>
    %28 = tpu.matmul %26, %27, %cst_22 {dimension_numbers = #tpu.dot_dimension_numbers<[1], [0], [0], [1], [0, 0, 1, 1], [], []>} : vector<16x64xbf16>, vector<64x32xbf16>, vector<16x32xf32> -> vector<16x32xf32>
    %c0_23 = arith.constant 0 : index
    %c0_24 = arith.constant 0 : index
    %29 = vector.load %arg9[%c0_23, %c0_24] : memref<1x32xf32, #tpu.memory_space<vmem>>, vector<1x32xf32>
    %30 = vector.broadcast %29 : vector<1x32xf32> to vector<16x32xf32>
    %31 = arith.addf %28, %30 : vector<16x32xf32>
    %cst_25 = arith.constant 0.000000e+00 : f32
    %32 = vector.broadcast %cst_25 : f32 to vector<16x32xf32>
    %33 = arith.subf %32, %31 : vector<16x32xf32>
    %34 = math.exp %33 : vector<16x32xf32>
    %cst_26 = arith.constant 1.000000e+00 : f32
    %35 = vector.broadcast %cst_26 : f32 to vector<16x32xf32>
    %36 = arith.addf %35, %34 : vector<16x32xf32>
    %37 = tpu.reciprocal %36 {approx = true} : vector<16x32xf32> -> vector<16x32xf32>
    %c0_27 = arith.constant 0 : index
    %c0_28 = arith.constant 0 : index
    %38 = vector.load %arg11[%c0_27, %c0_28] : memref<16x32xf32, #tpu.memory_space<vmem>>, vector<16x32xf32>
    tpu.vector_store %arg11[%c0_27, %c0_28], %37 {strides = array<i32>} : memref<16x32xf32, #tpu.memory_space<vmem>>, vector<16x32xf32>,
    return
  }
  func.func @transform_0(%arg0: i32) -> (i32, i32) {
    %c0_i32 = arith.constant 0 : i32
    %c0_i32_0 = arith.constant 0 : i32
    return %arg0, %c0_i32 : i32, i32
  }
  func.func @transform_1(%arg0: i32) -> (i32, i32) {
    %c0_i32 = arith.constant 0 : i32
    %c0_i32_0 = arith.constant 0 : i32
    %c0_i32_1 = arith.constant 0 : i32
    return %c0_i32, %c0_i32_0 : i32, i32
  }
  func.func @transform_2(%arg0: i32) -> (i32, i32) {
    %c0_i32 = arith.constant 0 : i32
    %c0_i32_0 = arith.constant 0 : i32
    %c0_i32_1 = arith.constant 0 : i32
    return %c0_i32, %c0_i32_0 : i32, i32
  }
  func.func @transform_3(%arg0: i32) -> (i32, i32) {
    %c0_i32 = arith.constant 0 : i32
    %c0_i32_0 = arith.constant 0 : i32
    %c0_i32_1 = arith.constant 0 : i32
    return %c0_i32, %c0_i32_0 : i32, i32
  }
  func.func @transform_4(%arg0: i32) -> (i32, i32) {
    %c0_i32 = arith.constant 0 : i32
    %c0_i32_0 = arith.constant 0 : i32
    %c0_i32_1 = arith.constant 0 : i32
    return %c0_i32, %c0_i32_0 : i32, i32
  }
  func.func @transform_5(%arg0: i32) -> (i32, i32) {
    %c0_i32 = arith.constant 0 : i32
    %c0_i32_0 = arith.constant 0 : i32
    %c0_i32_1 = arith.constant 0 : i32
    return %c0_i32, %c0_i32_0 : i32, i32
  }
  func.func @transform_6(%arg0: i32) -> (i32, i32) {
    %c0_i32 = arith.constant 0 : i32
    %c0_i32_0 = arith.constant 0 : i32
    %c0_i32_1 = arith.constant 0 : i32
    return %c0_i32, %c0_i32_0 : i32, i32
  }
  func.func @transform_7(%arg0: i32) -> (i32, i32) {
    %c0_i32 = arith.constant 0 : i32
    %c0_i32_0 = arith.constant 0 : i32
    %c0_i32_1 = arith.constant 0 : i32
    return %c0_i32, %c0_i32_0 : i32, i32
  }
  func.func @transform_8(%arg0: i32) -> (i32, i32) {
    %c0_i32 = arith.constant 0 : i32
    %c0_i32_0 = arith.constant 0 : i32
    %c0_i32_1 = arith.constant 0 : i32
    return %c0_i32, %c0_i32_0 : i32, i32
  }
  func.func @transform_9(%arg0: i32) -> (i32, i32) {
    %c0_i32 = arith.constant 0 : i32
    %c0_i32_0 = arith.constant 0 : i32
    return %arg0, %c0_i32 : i32, i32
  }
  func.func @transform_10(%arg0: i32) -> (i32, i32) {
    %c0_i32 = arith.constant 0 : i32
    %c0_i32_0 = arith.constant 0 : i32
    return %arg0, %c0_i32 : i32, i32
  }
}

</mosaic_0001>

<bundles_post_ra>
// kernel: tpu_custom_call.1
= control target key start
LH: loop header
LB: loop body
LE: loop exit
PB: predicated region body
PF: predicated region fallthrough
CT: control target
= control target key end

     0   :  { %s836_s13 = smov 0   ;;  %s917_s0 = inlined_call_operand.vmem [shape: f32[64,32], index: 0, kind: input, shape index: {}]   ;;  %s918_s1 = inlined_call_operand.vmem [shape: bf16[32,64], index: 1, kind: input, shape index: {}]   ;;  %s919_s2 = inlined_call_operand.vmem [shape: f32[1,64], index: 2, kind: input, shape index: {}]   ;;  %s920_s3 = inlined_call_operand.vmem [shape: bf16[64,32], index: 3, kind: input, shape index: {}]   ;;  %s921_s4 = inlined_call_operand.vmem [shape: f32[1,32], index: 4, kind: input, shape index: {}]   ;;  %s922_s5 = inlined_call_operand.vmem [shape: bf16[32,64], index: 5, kind: input, shape index: {}]   ;;  %s923_s6 = inlined_call_operand.vmem [shape: f32[1,64], index: 6, kind: input, shape index: {}]   ;;  %s924_s7 = inlined_call_operand.vmem [shape: bf16[64,32], index: 7, kind: input, shape index: {}]   ;;  %s925_s8 = inlined_call_operand.vmem [shape: f32[1,32], index: 8, kind: input, shape index: {}]   ;;  %s926_s9 = inlined_call_operand.vmem [shape: f32[64,32], index: 9, kind: output, shape index: {0}]   ;;  %s927_s10 = inlined_call_operand.vmem [shape: f32[64,32], index: 10, kind: output, shape index: {1}]  }
   0x1 LB: > { %s676_s14 = sadd.s32 4294967295, %s779_s13   ;;  %p680_p0 = scmp.ge.s32.totalorder %s779_s13, 1  ;;  %s779_s13 = sphi %s836_s13, %s21_s13  }
   0x2   : > { %p316_p1 = scmp.lt.s32.totalorder %s779_s13, 5 }
   0x4   : > { %p317_p2 = pnand %p680_p0, %p316_p1 }
   0x5   : > { %s681_s17 = sshll.u32 (!%p317_p2), %s676_s14, 1 }
   0x6   : > { %320 = sbr.rel (%p317_p2) target bundleno = 608 (0x260), region = 56  ;;  %p360_p3 = scmp.lt.s32.totalorder (!%p317_p2), %s681_s17, 7 }
   0xb   : > { %v742_v0 = vld [vmem:[%s918_s1 + $0x8] sm:$0xff]  ;;  %v741_v1 = vld [vmem:[%s918_s1] sm:$0xff]  ;;  %s929_s17 = smov (!%p360_p3, %s681_s17), 7  ;;  %vm401_vm0 = vcmask 261120   ;;  %v746_v5 = vld [vmem:[%s920_s3 + $0x18] sm:$0xff]  ;;  %vm458_vm1 = vcmask 523264  }
   0xc   : > { %411 = vmatpush.bf16.msra.mxu0 %v742_v0  ;;  %s850_s20 = sshll.u32 %s929_s17, 3  ;;  %466 = vmatpush.bf16.msra.mxu1 %v746_v5  ;;  %v745_v6 = vld [vmem:[%s920_s3 + $0x10] sm:$0xff]  ;;  %v744_v7 = vld [vmem:[%s920_s3 + $0x8] sm:$0xff]  ;;  %v743_v8 = vld [vmem:[%s920_s3] sm:$0xff] }
   0xd   : > { %s363_s23 = scalar_lea.vmem %s917_s0, %s850_s20  ;;  %v761_v10 = vld [vmem:[%s919_s2] ss:$0 sm:$0xff]  ;;  %v748_v17 = vld [vmem:[%s922_s5 + $0x8] sm:$0xff]  ;;  %s369_s24 = scalar_lea.vmem %s926_s9, %s850_s20  ;;  %v752_v27 = vld [vmem:[%s924_s7 + $0x18] sm:$0xff] }
   0xe   : > { %v378_v2 = vld [vmem:[%s363_s23] sm:$0xff]  ;;  %v379_v3 = vld [vmem:[%s363_s23 + $0x8] sm:$0xff]  ;;  %510 = vmatpush.bf16.msra.mxu2 %v748_v17  ;;  %564 = vmatpush.bf16.msra.mxu3 %v752_v27  ;;  %v751_v28 = vld [vmem:[%s924_s7 + $0x10] sm:$0xff]  ;;  %s375_s21 = scalar_lea.vmem %s927_s10, %s850_s20 }
   0xf   : > { %v380_v4 = vpack.c.bf16 %v379_v3, %v378_v2  ;;  %v747_v18 = vld [vmem:[%s922_s5] sm:$0xff]  ;;  %v750_v29 = vld [vmem:[%s924_s7 + $0x8] sm:$0xff] }
  0x10   : > { %412 = vmatpush.bf16.msra.mxu0 %v741_v1  ;;  %467 = vmatpush.bf16.msra.mxu1 %v745_v6  ;;  %v762_v19 = vld [vmem:[%s921_s4] ss:$0 sm:$0xff] }
  0x11   : > { %v749_v30 = vld [vmem:[%s924_s7] sm:$0xff] }
  0x12   : > { %511 = vmatpush.bf16.msra.mxu2 %v747_v18  ;;  %565 = vmatpush.bf16.msra.mxu3 %v751_v28  ;;  %v763_v32 = vld [vmem:[%s923_s6] ss:$0 sm:$0xff] }
  0x13   : > { %695 = vmatmul.msk.bf16.vlgmr.msra.gmra.mxu0 %vm401_vm0, %v380_v4  ;;  %v764_v39 = vld [vmem:[%s925_s8] ss:$0 sm:$0xff] }
  0x14   : > { %468 = vmatpush.bf16.msra.mxu1 %v744_v7 }
  0x16   : > { %566 = vmatpush.bf16.msra.mxu3 %v750_v29 }
  0x18   : > { %469 = vmatpush.bf16.msra.mxu1 %v743_v8 }
  0x1a   : > { %567 = vmatpush.bf16.msra.mxu3 %v749_v30 }
  0x90   : > { %v414_v9 = vpop.f32.mrf.mxu0 }
  0x91   : > { %v415_v11 = vadd.f32 %v761_v10, %v414_v9 }
  0x93   : > { %v419_v14 = vmax.f32 %v415_v11, 0.0 }
  0x98   : > { %v416_v12 = vpop.f32.mrf.mxu0 }
  0x99   : > { %v417_v13 = vadd.f32 %v761_v10, %v416_v12 }
  0x9b   : > { %v420_v15 = vmax.f32 %v417_v13, 0.0 }
  0x9d   : > { %v421_v16 = vpack.c.bf16 %v420_v15, %v419_v14 }
  0x9f   : > { %712 = vmatmul.msk.bf16.vlgmr.msra.gmra.mxu1 %vm458_vm1, %v421_v16 }
 0x11c   : > { %v471_v20 = vpop.f32.mrf.mxu1 }
 0x11d   : > { %v472_v21 = vadd.f32 %v762_v19, %v471_v20 }
 0x11f   : > { %v476_v22 = vmax.f32 %v472_v21, 0.0 }
 0x121   : > { %478 = vst.msk [vmem:[%s369_s24] sm:$0xff] %vm401_vm0, %v476_v22 }
 0x124   : > { %v473_v23 = vpop.f32.mrf.mxu1 }
 0x125   : > { %v474_v24 = vadd.f32 %v762_v19, %v473_v23 }
 0x127   : > { %v477_v25 = vmax.f32 %v474_v24, 0.0 }
 0x129   : > { %479 = vst.msk [vmem:[%s369_s24 + $0x8] sm:$0xff] %vm401_vm0, %v477_v25  ;;  %v480_v26 = vpack.c.bf16 %v477_v25, %v476_v22 }
 0x12b   : > { %721 = vmatmul.msk.bf16.vlgmr.msra.gmra.mxu2 %vm401_vm0, %v480_v26 }
 0x1ae   : > { %v513_v31 = vpop.f32.mrf.mxu2 }
 0x1af   : > { %v514_v33 = vadd.f32 %v763_v32, %v513_v31 }
 0x1b1   : > { %v518_v36 = vmax.f32 %v514_v33, 0.0 }
 0x1b6   : > { %v515_v34 = vpop.f32.mrf.mxu2 }
 0x1b7   : > { %v516_v35 = vadd.f32 %v763_v32, %v515_v34 }
 0x1b9   : > { %v519_v37 = vmax.f32 %v516_v35, 0.0 }
 0x1bb   : > { %v520_v38 = vpack.c.bf16 %v519_v37, %v518_v36 }
 0x1bd   : > { %738 = vmatmul.msk.bf16.vlgmr.msra.gmra.mxu3 %vm458_vm1, %v520_v38 }
 0x240   : > { %v569_v40 = vpop.f32.mrf.mxu3 }
 0x241   : > { %v570_v41 = vadd.f32 %v764_v39, %v569_v40 }
 0x243   : > { %v574_v42 = vsub.f32 0.0, %v570_v41 }
 0x245   : > { %v576_v43 = vmul.f32 1.442695, %v574_v42 }
 0x247   : > { %765 = vpow2.f32 %v576_v43 }
 0x248   : > { %v571_v44 = vpop.f32.mrf.mxu3 }
 0x249   : > { %v572_v45 = vadd.f32 %v764_v39, %v571_v44 }
 0x24b   : > { %v575_v46 = vsub.f32 0.0, %v572_v45 }
 0x24d   : > { %v766_v47 = vpop.eup %765  ;;  %v578_v48 = vmul.f32 1.442695, %v575_v46 }
 0x24e   : > { %v580_v49 = vadd.f32 1.0, %v766_v47 }
 0x24f   : > { %767 = vpow2.f32 %v578_v48 }
 0x250   : > { %769 = vrcp.f32 %v580_v49 }
 0x255   : > { %v768_v50 = vpop.eup %767 }
 0x256   : > { %v770_v51 = vpop.eup %769  ;;  %v581_v52 = vadd.f32 1.0, %v768_v50 }
 0x257   : > { %584 = vst.msk [vmem:[%s375_s21] sm:$0xff] %vm401_vm0, %v770_v51 }
 0x258   : > { %771 = vrcp.f32 %v581_v52 }
 0x25e   : > { %v772_v53 = vpop.eup %771 }
 0x25f   : > { %585 = vst.msk [vmem:[%s375_s21 + $0x8] sm:$0xff] %vm401_vm0, %v772_v53 }
 0x260 PF: > { %s21_s13 = sadd.s32 1, %s779_s13  }
 0x261   : > { %p18_p4 = scmp.ge.s32.totalorder %s21_s13, 6  }
 0x263   :  { %20 = sbr.rel (!%p18_p4) target bundleno = 1 (0x1), region = 98 }

</bundles_post_ra>
